<compile_context>
chip_gen: v7x
topology: tpu7x:2x2x1
jax: 0.10.0
libtpu: 0.0.40
codegen_flags: <defaults>
</compile_context>

<pallas_src>
import jax
import jax.numpy as jnp
from jax.experimental import pallas as pl
from jax.experimental.pallas import tpu as pltpu


def _round_up(a, b):
    return (a + b - 1) // b * b


# ----------------------------- Pallas kernel ---------------------------------
def encoder_kernel(adj_ref, xs_ref, dinv_ref, w_ref, b_ref, alpha_ref,
                   o_ref, acc_ref):
    # adj_ref:   (TM, TK)  bf16   tile of (A + I)
    # xs_ref:    (TK, Fp)  bf16   tile of D^-1/2 X
    # dinv_ref:  (TM, 1)   f32    row-side D^-1/2
    # w_ref:     (Fp, Hp)  f32    GCN weight (H padded to 128 lanes)
    # b_ref:     (1, Hp)   f32
    # alpha_ref: (1, Hp)   f32    PReLU per-channel slope
    # o_ref:     (TM, Hp)  f32
    # acc_ref:   (TM, Fp)  f32    VMEM accumulator over the contraction axis
    k = pl.program_id(1)

    @pl.when(k == 0)
    def _init():
        acc_ref[...] = jnp.zeros_like(acc_ref)

    # (A + I) tile @ (D^-1/2 X) tile   — bf16 in, f32 accumulate on the MXU.
    acc_ref[...] += jnp.dot(adj_ref[...], xs_ref[...],
                            preferred_element_type=jnp.float32)

    @pl.when(k == pl.num_programs(1) - 1)
    def _finalize():
        agg = dinv_ref[...] * acc_ref[...]                       # row-side D^-1/2
        pre = jnp.dot(agg, w_ref[...],
                      preferred_element_type=jnp.float32) + b_ref[...]
        o_ref[...] = jnp.where(pre > 0, pre, alpha_ref[...] * pre)   # PReLU


# ------------------------------ wrapper ---------------------------------------
def encoder_forward(x, edge_index, weight, bias, prelu_alpha,
                    *, row_tile=512, col_tile=1024):
    """GCNConv(x, edge_index) followed by per-channel PReLU (PyG semantics)."""
    n, f = x.shape
    h = weight.shape[1]

    # ---- glue: dense (A + I) and D^-1/2; A_hat itself is never materialized ----
    # TODO(synk): for large sparse graphs replace the dense (A+I) matmul with a
    # CSR gather/scatter aggregation driven by PrefetchScalarGridSpec row pointers.
    src, dst = edge_index[0], edge_index[1]
    loop = jnp.arange(n, dtype=edge_index.dtype)
    src = jnp.concatenate([src, loop])
    dst = jnp.concatenate([dst, loop])
    adj = jnp.zeros((n, n), jnp.float32).at[dst, src].add(1.0)   # rows = targets
    deg = adj.sum(axis=1)
    dinv = jax.lax.rsqrt(jnp.maximum(deg, 1e-12))

    # column-side D^-1/2 folded into X (O(N*F), trivial next to the N^2 matmul)
    xs = dinv[:, None] * x.astype(jnp.float32)

    # ---- TPU-friendly padding: lane-dense H, (8,128)-aligned tiles ----
    tm = min(row_tile, _round_up(n, 8))        # row tile (output / adj rows)
    tk = min(col_tile, _round_up(n, 128))      # contraction tile (adj cols)
    n_rows = _round_up(n, tm)
    n_cols = _round_up(n, tk)
    f_pad = _round_up(f, 8)
    h_pad = _round_up(h, 128)

    adj_p = jnp.zeros((n_rows, n_cols), jnp.bfloat16).at[:n, :n].set(
        adj.astype(jnp.bfloat16))
    xs_p = jnp.zeros((n_cols, f_pad), jnp.bfloat16).at[:n, :f].set(
        xs.astype(jnp.bfloat16))
    dinv_p = jnp.zeros((n_rows, 1), jnp.float32).at[:n, 0].set(dinv)
    w_p = jnp.zeros((f_pad, h_pad), jnp.float32).at[:f, :h].set(
        weight.astype(jnp.float32))
    b_p = jnp.zeros((1, h_pad), jnp.float32).at[0, :h].set(bias.astype(jnp.float32))
    a_p = jnp.zeros((1, h_pad), jnp.float32).at[0, :h].set(
        prelu_alpha.astype(jnp.float32))

    grid = (n_rows // tm, n_cols // tk)

    out = pl.pallas_call(
        encoder_kernel,
        out_shape=jax.ShapeDtypeStruct((n_rows, h_pad), jnp.float32),
        grid_spec=pltpu.PrefetchScalarGridSpec(
            num_scalar_prefetch=0,
            grid=grid,
            in_specs=[
                pl.BlockSpec((tm, tk), lambda i, k: (i, k)),        # (A+I) tile
                pl.BlockSpec((tk, f_pad), lambda i, k: (k, 0)),     # D^-1/2 X tile
                pl.BlockSpec((tm, 1), lambda i, k: (i, 0)),         # row D^-1/2
                pl.BlockSpec((f_pad, h_pad), lambda i, k: (0, 0)),  # W
                pl.BlockSpec((1, h_pad), lambda i, k: (0, 0)),      # bias
                pl.BlockSpec((1, h_pad), lambda i, k: (0, 0)),      # PReLU alpha
            ],
            out_specs=pl.BlockSpec((tm, h_pad), lambda i, k: (i, 0)),
            scratch_shapes=[pltpu.VMEM((tm, f_pad), jnp.float32)],
        ),
        compiler_params=pltpu.CompilerParams(
            dimension_semantics=("parallel", "arbitrary")),
    )(adj_p, xs_p, dinv_p, w_p, b_p, a_p)

    return out[:n, :h]


# --------------------------------- main ---------------------------------------
if __name__ == "__main__":
    key = jax.random.PRNGKey(0)

    num_nodes = 8        # N
    num_features = 4     # data.num_features
    hidden = 32          # hidden

    k_x, k_w, _ = jax.random.split(key, 3)

    # deterministic inputs / parameters
    x = jax.random.normal(k_x, (num_nodes, num_features), jnp.float32)

    # GCNConv weight: glorot-style init, shape (in_features, hidden); bias zeros
    limit = (6.0 / (num_features + hidden)) ** 0.5
    weight = jax.random.uniform(k_w, (num_features, hidden), jnp.float32,
                                minval=-limit, maxval=limit)
    bias = jnp.zeros((hidden,), jnp.float32)

    # PReLU per-channel slope (PyTorch default init = 0.25)
    prelu_alpha = jnp.full((hidden,), 0.25, jnp.float32)

    # small deterministic edge list (directed edges; self-loops added inside)
    src = jnp.array([0, 1, 2, 3, 4, 5, 6, 7, 0, 2], dtype=jnp.int32)
    dst = jnp.array([1, 2, 3, 4, 5, 6, 7, 0, 4, 6], dtype=jnp.int32)
    edge_index = jnp.stack([src, dst], axis=0)

    out = encoder_forward(x, edge_index, weight, bias, prelu_alpha)
    out = jax.block_until_ready(out)

    # reference check in plain JAX (full f32, no Pallas)
    loop = jnp.arange(num_nodes, dtype=jnp.int32)
    s = jnp.concatenate([src, loop]); d = jnp.concatenate([dst, loop])
    adj = jnp.zeros((num_nodes, num_nodes), jnp.float32).at[d, s].add(1.0)
    deg = adj.sum(axis=1)
    dinv = 1.0 / jnp.sqrt(deg)
    a_hat = dinv[:, None] * adj * dinv[None, :]
    ref = a_hat @ (x @ weight) + bias[None, :]
    ref = jnp.where(ref > 0, ref, prelu_alpha[None, :] * ref)

    assert out.shape == (num_nodes, hidden)
    # kernel feeds the MXU bf16 operands (f32 accumulate) -> tolerance ~bf16 eps
    assert jnp.allclose(out, ref, atol=2e-2, rtol=2e-2)

    print("KERNEL_OK")
</pallas_src>

<mosaic_0001>
module attributes {stable_mosaic.version = 11 : i64} {
  func.func @encoder_kernel(%arg0: i32, %arg1: i32, %arg2: memref<8x128xbf16, #tpu.memory_space<vmem>>, %arg3: memref<128x8xbf16, #tpu.memory_space<vmem>>, %arg4: memref<8x1xf32, #tpu.memory_space<vmem>>, %arg5: memref<8x128xf32, #tpu.memory_space<vmem>>, %arg6: memref<1x128xf32, #tpu.memory_space<vmem>>, %arg7: memref<1x128xf32, #tpu.memory_space<vmem>>, %arg8: memref<8x128xf32, #tpu.memory_space<vmem>>, %arg9: memref<8x8xf32, #tpu.memory_space<vmem>>) attributes {dimension_semantics = [#tpu.dimension_semantics<parallel>, #tpu.dimension_semantics<arbitrary>], iteration_bounds = array<i64: 1, 1>, scalar_prefetch = 0 : i64, scratch_operands = 1 : i64, tpu.core_type = #tpu.core_type<tc>, window_params = [{transform_indices = @transform_0, window_bounds = array<i64: 8, 128>}, {transform_indices = @transform_1, window_bounds = array<i64: 128, 8>}, {transform_indices = @transform_2, window_bounds = array<i64: 8, 1>}, {pipeline_mode = #tpu.pipeline_mode<synchronous>, transform_indices = @transform_3, window_bounds = array<i64: 8, 128>}, {pipeline_mode = #tpu.pipeline_mode<synchronous>, transform_indices = @transform_4, window_bounds = array<i64: 1, 128>}, {pipeline_mode = #tpu.pipeline_mode<synchronous>, transform_indices = @transform_5, window_bounds = array<i64: 1, 128>}, {transform_indices = @transform_6, window_bounds = array<i64: 8, 128>}]} {
    %c0_i32 = arith.constant 0 : i32
    %0 = arith.cmpi eq, %arg1, %c0_i32 : i32
    %1 = arith.extui %0 : i1 to i32
    %c0_i32_0 = arith.constant 0 : i32
    %2 = arith.cmpi ne, %1, %c0_i32_0 : i32
    scf.if %2 {
      %cst_10 = arith.constant 0.000000e+00 : f32
      %12 = vector.broadcast %cst_10 : f32 to vector<8x8xf32>
      %c0_11 = arith.constant 0 : index
      %c0_12 = arith.constant 0 : index
      %13 = vector.load %arg9[%c0_11, %c0_12] : memref<8x8xf32, #tpu.memory_space<vmem>>, vector<8x8xf32>
      tpu.vector_store %arg9[%c0_11, %c0_12], %12 {strides = array<i32>} : memref<8x8xf32, #tpu.memory_space<vmem>>, vector<8x8xf32>,
    } else {
    }
    %c0 = arith.constant 0 : index
    %c0_1 = arith.constant 0 : index
    %3 = vector.load %arg9[%c0, %c0_1] : memref<8x8xf32, #tpu.memory_space<vmem>>, vector<8x8xf32>
    %c0_2 = arith.constant 0 : index
    %c0_3 = arith.constant 0 : index
    %4 = vector.load %arg2[%c0_2, %c0_3] : memref<8x128xbf16, #tpu.memory_space<vmem>>, vector<8x128xbf16>
    %c0_4 = arith.constant 0 : index
    %c0_5 = arith.constant 0 : index
    %5 = vector.load %arg3[%c0_4, %c0_5] : memref<128x8xbf16, #tpu.memory_space<vmem>>, vector<128x8xbf16>
    %cst = arith.constant dense<0.000000e+00> : vector<8x8xf32>
    %6 = tpu.matmul %4, %5, %cst {dimension_numbers = #tpu.dot_dimension_numbers<[1], [0], [0], [1], [0, 0, 1, 1], [], []>} : vector<8x128xbf16>, vector<128x8xbf16>, vector<8x8xf32> -> vector<8x8xf32>
    %7 = arith.addf %3, %6 : vector<8x8xf32>
    %c0_6 = arith.constant 0 : index
    %c0_7 = arith.constant 0 : index
    %8 = vector.load %arg9[%c0_6, %c0_7] : memref<8x8xf32, #tpu.memory_space<vmem>>, vector<8x8xf32>
    tpu.vector_store %arg9[%c0_6, %c0_7], %7 {strides = array<i32>} : memref<8x8xf32, #tpu.memory_space<vmem>>, vector<8x8xf32>,
    %c0_i32_8 = arith.constant 0 : i32
    %9 = arith.cmpi eq, %arg1, %c0_i32_8 : i32
    %10 = arith.extui %9 : i1 to i32
    %c0_i32_9 = arith.constant 0 : i32
    %11 = arith.cmpi ne, %10, %c0_i32_9 : i32
    scf.if %11 {
      %c0_10 = arith.constant 0 : index
      %c0_11 = arith.constant 0 : index
      %12 = vector.load %arg4[%c0_10, %c0_11] : memref<8x1xf32, #tpu.memory_space<vmem>>, vector<8x1xf32>
      %c0_12 = arith.constant 0 : index
      %c0_13 = arith.constant 0 : index
      %13 = vector.load %arg9[%c0_12, %c0_13] : memref<8x8xf32, #tpu.memory_space<vmem>>, vector<8x8xf32>
      %14 = vector.broadcast %12 : vector<8x1xf32> to vector<8x8xf32>
      %15 = arith.mulf %14, %13 : vector<8x8xf32>
      %c0_14 = arith.constant 0 : index
      %c0_15 = arith.constant 0 : index
      %16 = vector.load %arg5[%c0_14, %c0_15] : memref<8x128xf32, #tpu.memory_space<vmem>>, vector<8x128xf32>
      %cst_16 = arith.constant dense<0.000000e+00> : vector<8x128xf32>
      %17 = tpu.matmul %15, %16, %cst_16 {dimension_numbers = #tpu.dot_dimension_numbers<[1], [0], [0], [1], [0, 0, 1, 1], [], []>} : vector<8x8xf32>, vector<8x128xf32>, vector<8x128xf32> -> vector<8x128xf32>
      %c0_17 = arith.constant 0 : index
      %c0_18 = arith.constant 0 : index
      %18 = vector.load %arg6[%c0_17, %c0_18] : memref<1x128xf32, #tpu.memory_space<vmem>>, vector<1x128xf32>
      %19 = vector.broadcast %18 : vector<1x128xf32> to vector<8x128xf32>
      %20 = arith.addf %17, %19 : vector<8x128xf32>
      %cst_19 = arith.constant 0.000000e+00 : f32
      %21 = vector.broadcast %cst_19 : f32 to vector<8x128xf32>
      %22 = arith.cmpf ogt, %20, %21 : vector<8x128xf32>
      %c0_20 = arith.constant 0 : index
      %c0_21 = arith.constant 0 : index
      %23 = vector.load %arg7[%c0_20, %c0_21] : memref<1x128xf32, #tpu.memory_space<vmem>>, vector<1x128xf32>
      %24 = vector.broadcast %23 : vector<1x128xf32> to vector<8x128xf32>
      %25 = arith.mulf %24, %20 : vector<8x128xf32>
      %26 = arith.select %22, %20, %25 : vector<8x128xi1>, vector<8x128xf32>
      %c0_22 = arith.constant 0 : index
      %c0_23 = arith.constant 0 : index
      %27 = vector.load %arg8[%c0_22, %c0_23] : memref<8x128xf32, #tpu.memory_space<vmem>>, vector<8x128xf32>
      tpu.vector_store %arg8[%c0_22, %c0_23], %26 {strides = array<i32>} : memref<8x128xf32, #tpu.memory_space<vmem>>, vector<8x128xf32>,
    } else {
    }
    return
  }
  func.func @transform_0(%arg0: i32, %arg1: i32) -> (i32, i32) {
    %c0_i32 = arith.constant 0 : i32
    return %arg0, %arg1 : i32, i32
  }
  func.func @transform_1(%arg0: i32, %arg1: i32) -> (i32, i32) {
    %c0_i32 = arith.constant 0 : i32
    %c0_i32_0 = arith.constant 0 : i32
    return %arg1, %c0_i32 : i32, i32
  }
  func.func @transform_2(%arg0: i32, %arg1: i32) -> (i32, i32) {
    %c0_i32 = arith.constant 0 : i32
    %c0_i32_0 = arith.constant 0 : i32
    return %arg0, %c0_i32 : i32, i32
  }
  func.func @transform_3(%arg0: i32, %arg1: i32) -> (i32, i32) {
    %c0_i32 = arith.constant 0 : i32
    %c0_i32_0 = arith.constant 0 : i32
    %c0_i32_1 = arith.constant 0 : i32
    return %c0_i32, %c0_i32_0 : i32, i32
  }
  func.func @transform_4(%arg0: i32, %arg1: i32) -> (i32, i32) {
    %c0_i32 = arith.constant 0 : i32
    %c0_i32_0 = arith.constant 0 : i32
    %c0_i32_1 = arith.constant 0 : i32
    return %c0_i32, %c0_i32_0 : i32, i32
  }
  func.func @transform_5(%arg0: i32, %arg1: i32) -> (i32, i32) {
    %c0_i32 = arith.constant 0 : i32
    %c0_i32_0 = arith.constant 0 : i32
    %c0_i32_1 = arith.constant 0 : i32
    return %c0_i32, %c0_i32_0 : i32, i32
  }
  func.func @transform_6(%arg0: i32, %arg1: i32) -> (i32, i32) {
    %c0_i32 = arith.constant 0 : i32
    %c0_i32_0 = arith.constant 0 : i32
    return %arg0, %c0_i32 : i32, i32
  }
}

</mosaic_0001>

<bundles_post_ra>
// kernel: tpu_custom_call.1
= control target key start
LH: loop header
LB: loop body
LE: loop exit
PB: predicated region body
PF: predicated region fallthrough
CT: control target
= control target key end

     0   :  { %v341_v1 = vmov 0.0   ;;  %vm342_vm0 = vmmov 0   ;;  %v343_v3 = vmov 0   ;;  %vm29_vm1 = vcmask 64512   ;;  %s434_s0 = inlined_call_operand.vmem [shape: bf16[8,128], index: 0, kind: input, shape index: {}]   ;;  %s435_s1 = inlined_call_operand.vmem [shape: bf16[128,8], index: 1, kind: input, shape index: {}]   ;;  %s436_s2 = inlined_call_operand.vmem [shape: f32[8,1], index: 2, kind: input, shape index: {}]   ;;  %s437_s3 = inlined_call_operand.vmem [shape: f32[8,128], index: 3, kind: input, shape index: {}]   ;;  %s438_s4 = inlined_call_operand.vmem [shape: f32[1,128], index: 4, kind: input, shape index: {}]   ;;  %s439_s5 = inlined_call_operand.vmem [shape: f32[1,128], index: 5, kind: input, shape index: {}]   ;;  %s440_s6 = inlined_call_operand.hbm [shape: f32[8,128], index: 6, kind: output, shape index: {}]  }
   0x1   :  { %v309_v0 = vld [vmem:[%s435_s1] sm:$0xff]   ;;  %279 = vmatprep.subr.bf16.mxu0 %v341_v1  ;;  %299 = vmatprep.subr.mxu1 %v341_v1  ;;  %v310_v2 = vld [vmem:[%s435_s1 + $0x8] sm:$0xff]   ;;  %30 = vst.msk [vmem:[#allocation2] sm:$0xff] %vm29_vm1, %v341_v1  ;;  %v311_v4 = vld [vmem:[%s435_s1 + $0x10] sm:$0xff]  }
   0x2   :  { %280 = vmatpush3.bf16.msra.mxu0 %v309_v0  ;;  %295 = vmatprep.mubr.msk.bf16.mxu0 %vm342_vm0, %v341_v1  ;;  %v143_v5 = vld [vmem:[%s436_s2] sm:$0xff] }
   0x3   :  { %281 = vmatprep.subr.bf16.mxu0 %v341_v1  ;;  %308 = vset.pattern.permute.xlu0 %v343_v3 }
   0x4   :  { %301 = vmatprep.mubr.msk.f32.mxu1 %vm342_vm0, %v341_v1 }
   0x6   :  { %282 = vmatpush3.bf16.msra.mxu0 %v310_v2 }
   0x7   :  { %283 = vmatprep.subr.bf16.mxu0 %v341_v1 }
   0x8   :  { %11 = vsyncpa [#allocation4], 0  ;;  %147 = vperm.xlu0 %308, %v143_v5   ;;  %v312_v6 = vld [vmem:[%s435_s1 + $0x18] sm:$0xff]   ;;  %v313_v7 = vld [vmem:[%s435_s1 + $0x20] sm:$0xff]   ;;  %s344_s19 = smov [#allocation3]  }
   0x9   :  { %v314_v8 = vld [vmem:[%s435_s1 + $0x28] sm:$0xff]   ;;  %v315_v9 = vld [vmem:[%s435_s1 + $0x30] sm:$0xff]   ;;  %v316_v10 = vld [vmem:[%s435_s1 + $0x38] sm:$0xff]   ;;  %s249_s20 = sshll.u32 %s344_s19, 4  ;;  %s250_s20 = int_to_ptr.vmem [resolvable:$true] %s249_s20 }
   0xa   :  { %284 = vmatpush3.bf16.msra.mxu0 %v311_v4  ;;  %v32_v11 = vld [vmem:[%s434_s0] sm:$0xf]  ;;  %s317_s21 = scalar_lea.vmem %s250_s20, 128  ;;  %p322_p1 = scmp.lt.s32.totalorder %s250_s20, %s250_s20 }
   0xb   :  { %285 = vmatprep.subr.bf16.mxu0 %v341_v1  ;;  %v151_v12 = vld [vmem:[%s437_s3] sm:$0xff]  ;;  %p318_p0 = scmp.ne.s32.totalorder %s250_s20, %s317_s21  ;;  %p323_p2 = scmp.lt.s32.totalorder %s317_s21, %s317_s21 }
   0xc   :  { %300 = vmatpush3.msra.mxu1 %v151_v12  ;;  %v31_v13 = vld [vmem:[#allocation2] sm:$0xff] }
   0xd   :  { %v265_v22 = vld [vmem:[%s438_s4] ss:$0 sm:$0xff]  ;;  %p324_p3 = por %p323_p2, %p322_p1 }
   0xe   :  { %286 = vmatpush3.bf16.msra.mxu0 %v312_v6  ;;  %v267_v24 = vld [vmem:[%s439_s5] ss:$0 sm:$0xff] }
   0xf   :  { %287 = vmatprep.subr.bf16.mxu0 %v341_v1  ;;  %p325_p4 = pnand %p324_p3, %p318_p0 }
  0x12   :  { %288 = vmatpush3.bf16.msra.mxu0 %v313_v7 }
  0x13   :  { %289 = vmatprep.subr.bf16.mxu0 %v341_v1 }
  0x16   :  { %290 = vmatpush3.bf16.msra.mxu0 %v314_v8 }
  0x17   :  { %291 = vmatprep.subr.bf16.mxu0 %v341_v1 }
  0x1a   :  { %292 = vmatpush3.bf16.msra.mxu0 %v315_v9 }
  0x1b   :  { %293 = vmatprep.subr.bf16.mxu0 %v341_v1 }
  0x1e   :  { %294 = vmatpush3.bf16.msra.mxu0 %v316_v10 }
  0x21   :  { %296 = vmatmul.mubr.bf16.vlgmr.msra.gmra.mrb[0].mxu0 %v32_v11 }
  0x87   :  { %v148_v19 = vpop.permute.xlu0 %147 }
  0xf4   :  { %v131_v14 = vpop.f32.mrb[0].mxu0 }
  0xf5   :  { %v137_v15 = vadd.f32 %v131_v14, %v31_v13  ;;  %v297_v16 = vpop.f32.mrb[1].mxu0 }
  0xf6   :  { %v134_v17 = vpop.f32.mrb[2].mxu0 }
  0xf7   :  { %139 = vst.msk [vmem:[#allocation2] sm:$0xff] %vm29_vm1, %v137_v15  ;;  %v298_v18 = vpop.f32.mrb[3].mxu0 }
  0xfe   :  { %v144_v20 = vld [vmem:[#allocation2] sm:$0xff] }
  0xff   :  { %v150_v21 = vmul.f32 %v148_v19, %v144_v20 }
 0x101   :  { %302 = vmatmul.mubr.msk.f32.vlgmr.msra.gmra.mrb[0].mxu1 %vm29_vm1, %v150_v21 }
 0x1d4   :  { %v228_v23 = vpop.f32.mrb[0].mxu1 }
 0x1d5   :  { %v229_v25 = vadd.f32 %v265_v22, %v228_v23  ;;  %v303_v26 = vpop.f32.mrb[1].mxu1 }
 0x1d7   :  { %v240_v27 = vmul.f32 %v267_v24, %v229_v25  ;;  %vm232_vm2 = vcmp.gt.f32.partialorder %v229_v25, 0.0 }
 0x1d9   :  { %v241_v28 = vsel %vm232_vm2, %v229_v25, %v240_v27 }
 0x1da   :  { %242 = vst [vmem:[#allocation3] sm:$0xff] %v241_v28 }
 0x1db   :  { %328 = shalt.err (!%p325_p4)
}
 0x1dc   :  { %s329_s5 = scalar_lea.hbm %s440_s6, 128 }
 0x1dd   :  { %p330_p5 = scmp.ne.s32.totalorder %s440_s6, %s329_s5  ;;  %p333_p6 = scmp.lt.u32.totalorder %s329_s5, %s440_s6 }
 0x1df   :  { %p335_p7 = pnand %p333_p6, %p330_p5 }
 0x1e1   :  { %338 = shalt.err (!%p335_p7)
}
 0x1e2   :  { %252 = dma.vmem_to_hbm [thread:$0]  %s250_s20, 128, %s440_s6, [#allocation4]  }
 0x1e3   :  { %339 = dma.done.wait [#allocation4], 128  }
 0x1e4   :  { %340 = vsyncadd [#allocation4], 4294967168 }
 0x1e5   :  { %256 = vsyncpa [#allocation4], 1 }

</bundles_post_ra>
